<compile_context>
chip_gen: v5e
topology: v5e:2x2
jax: 0.10.0
libtpu: 0.0.40
codegen_flags: <defaults>
</compile_context>

<pallas_src>
import jax
import jax.numpy as jnp
from jax.experimental import pallas as pl
from jax.experimental.pallas import tpu as pltpu


_LOG_CLAMP = -100.0            # matches torch.nn.BCELoss log clamping
_TARGET_BLOCK_BYTES = 4 << 20  # per-buffer block budget (x2 for double buffering)


# ----------------------------- kernels ------------------------------------- #

def _bce_partial_kernel(pred_ref, gt_ref, out_ref):
    """Partial (un-normalized) BCE sum over one lane chunk."""
    p = pred_ref[...].astype(jnp.float32)
    y = gt_ref[...].astype(jnp.float32)
    # General (soft-label-safe) BCE, with PyTorch's -100 clamp on the logs.
    log_p = jnp.maximum(jnp.log(p), _LOG_CLAMP)
    log_1mp = jnp.maximum(jnp.log(1.0 - p), _LOG_CLAMP)
    s = jnp.sum(-(y * log_p + (1.0 - y) * log_1mp))
    out_ref[...] = jnp.broadcast_to(s, out_ref.shape)


def _neglog_partial_kernel(x_ref, out_ref):
    """Partial sum of -log(x) over one lane chunk."""
    x = x_ref[...].astype(jnp.float32)
    s = -jnp.sum(jnp.log(x))
    out_ref[...] = jnp.broadcast_to(s, out_ref.shape)


# ----------------------------- wrappers ------------------------------------ #

def _as_2d(x):
    """Free (contiguous, copy-less) collapse to (rows, lanes), lane axis last."""
    if x.ndim == 1:
        return x.reshape(1, -1)
    if x.ndim == 2:
        return x
    rows = 1
    for d in x.shape[:-2]:
        rows *= d
    return x.reshape(rows, x.shape[-2] * x.shape[-1])


def _pick_chunk(lanes, rows, itemsize):
    """Largest multiple of 128 dividing `lanes` that keeps one block under the
    per-buffer VMEM budget; falls back to the full extent when 128 does not
    divide `lanes` (full-dim blocks are always legal)."""
    if lanes % 128 != 0:
        return lanes
    limit = (_TARGET_BLOCK_BYTES // max(1, rows * itemsize)) // 128 * 128
    limit = max(128, min(limit, lanes))
    best = 128
    for c in range(128, limit + 1, 128):
        if lanes % c == 0:
            best = c
    return best


def _partial_sums(kernel, arrays_2d):
    """Run `kernel` over lane chunks of the given same-shape 2-D arrays and
    return the per-chunk partial sums as a (num_chunks,) f32 vector."""
    rows, lanes = arrays_2d[0].shape
    chunk = _pick_chunk(lanes, rows, arrays_2d[0].dtype.itemsize)
    num_chunks = lanes // chunk

    in_spec = pl.BlockSpec((rows, chunk), lambda j: (0, j))
    out = pl.pallas_call(
        kernel,
        out_shape=jax.ShapeDtypeStruct((num_chunks, 8, 128), jnp.float32),
        grid_spec=pltpu.PrefetchScalarGridSpec(
            num_scalar_prefetch=0,
            grid=(num_chunks,),
            in_specs=[in_spec] * len(arrays_2d),
            # (8,128)-aligned partial-sum tile per chunk -> unmasked stores and
            # distinct output blocks, so the chunk axis can run in parallel.
            out_specs=pl.BlockSpec((1, 8, 128), lambda j: (j, 0, 0)),
        ),
        compiler_params=pltpu.CompilerParams(
            dimension_semantics=("parallel",),  # chunks independent -> v7x 2 TCs
        ),
    )(*arrays_2d)
    return out[:, 0, 0]


def loss_g_pallas(mask_gt, mask_pred, pred_D, l=0.005):
    """Loss_G forward: BCE(mask_pred, mask_gt) + l * sum_i mean(sum(-log(pred_D[i]), (2,3)))."""
    mask_gt = jnp.asarray(mask_gt)
    mask_pred = jnp.asarray(mask_pred)

    bce_sum = jnp.sum(
        _partial_sums(_bce_partial_kernel, [_as_2d(mask_pred), _as_2d(mask_gt)])
    )
    loss = bce_sum / jnp.float32(mask_pred.size)

    for p in pred_D:
        p = jnp.asarray(p)
        n, c = p.shape[0], p.shape[1]
        neglog_sum = jnp.sum(_partial_sums(_neglog_partial_kernel, [_as_2d(p)]))
        loss = loss + jnp.float32(l) * neglog_sum / jnp.float32(n * c)
    return loss


def loss_g_reference(mask_gt, mask_pred, pred_D, l=0.005):
    """Pure-JAX reference mirroring the PyTorch forward."""
    p = jnp.asarray(mask_pred, jnp.float32)
    y = jnp.asarray(mask_gt, jnp.float32)
    log_p = jnp.maximum(jnp.log(p), _LOG_CLAMP)
    log_1mp = jnp.maximum(jnp.log(1.0 - p), _LOG_CLAMP)
    loss = jnp.mean(-(y * log_p + (1.0 - y) * log_1mp))
    for pd in pred_D:
        pd = jnp.asarray(pd, jnp.float32)
        loss = loss + l * jnp.mean(jnp.sum(-jnp.log(pd), axis=(2, 3)))
    return loss


if __name__ == "__main__":
    # Small deterministic example shapes:
    #   masks: (2, 1, 16, 16); pred_D: list of 2 entries, each (2, 4, 16, 16)
    key = jax.random.PRNGKey(0)
    N, H, W = 2, 16, 16
    C_D = 4
    L = 2

    k_gt, k_pred, *k_d = jax.random.split(key, 2 + L)

    mask_gt = (jax.random.uniform(k_gt, (N, 1, H, W)) > 0.5).astype(jnp.float32)
    mask_pred = jax.nn.sigmoid(jax.random.normal(k_pred, (N, 1, H, W), jnp.float32))
    # values strictly in (0, 1) so -log is finite
    pred_D = [
        jax.nn.sigmoid(jax.random.normal(k_d[i], (N, C_D, H, W), jnp.float32))
        for i in range(L)
    ]

    loss = jax.block_until_ready(loss_g_pallas(mask_gt, mask_pred, pred_D))
    ref = jax.block_until_ready(loss_g_reference(mask_gt, mask_pred, pred_D))

    assert jnp.allclose(loss, ref, rtol=1e-5, atol=1e-4), (loss, ref)
    print("KERNEL_OK")
</pallas_src>

<mosaic_0001>
module attributes {stable_mosaic.version = 11 : i64} {
  func.func @_bce_partial_kernel(%arg0: i32, %arg1: memref<2x256xf32, #tpu.memory_space<vmem>>, %arg2: memref<2x256xf32, #tpu.memory_space<vmem>>, %arg3: memref<1x8x128xf32, #tpu.memory_space<vmem>>) attributes {dimension_semantics = [#tpu.dimension_semantics<parallel>], iteration_bounds = array<i64: 1>, scalar_prefetch = 0 : i64, scratch_operands = 0 : i64, tpu.core_type = #tpu.core_type<tc>, window_params = [{transform_indices = @transform_0, window_bounds = array<i64: 2, 256>}, {transform_indices = @transform_1, window_bounds = array<i64: 2, 256>}, {transform_indices = @transform_2, window_bounds = array<i64: 1, 8, 128>}]} {
    %c0 = arith.constant 0 : index
    %c0_0 = arith.constant 0 : index
    %0 = vector.load %arg1[%c0, %c0_0] : memref<2x256xf32, #tpu.memory_space<vmem>>, vector<2x256xf32>
    %c0_1 = arith.constant 0 : index
    %c0_2 = arith.constant 0 : index
    %1 = vector.load %arg2[%c0_1, %c0_2] : memref<2x256xf32, #tpu.memory_space<vmem>>, vector<2x256xf32>
    %2 = math.log %0 : vector<2x256xf32>
    %cst = arith.constant -1.000000e+02 : f32
    %3 = vector.broadcast %cst : f32 to vector<2x256xf32>
    %4 = arith.maximumf %2, %3 : vector<2x256xf32>
    %cst_3 = arith.constant 1.000000e+00 : f32
    %5 = vector.broadcast %cst_3 : f32 to vector<2x256xf32>
    %6 = arith.subf %5, %0 : vector<2x256xf32>
    %7 = math.log %6 : vector<2x256xf32>
    %cst_4 = arith.constant -1.000000e+02 : f32
    %8 = vector.broadcast %cst_4 : f32 to vector<2x256xf32>
    %9 = arith.maximumf %7, %8 : vector<2x256xf32>
    %10 = arith.mulf %1, %4 : vector<2x256xf32>
    %cst_5 = arith.constant 1.000000e+00 : f32
    %11 = vector.broadcast %cst_5 : f32 to vector<2x256xf32>
    %12 = arith.subf %11, %1 : vector<2x256xf32>
    %13 = arith.mulf %12, %9 : vector<2x256xf32>
    %14 = arith.addf %10, %13 : vector<2x256xf32>
    %cst_6 = arith.constant 0.000000e+00 : f32
    %15 = vector.broadcast %cst_6 : f32 to vector<2x256xf32>
    %16 = arith.subf %15, %14 : vector<2x256xf32>
    %17 = vector.shape_cast %16 : vector<2x256xf32> to vector<1x2x256xf32>
    %cst_7 = arith.constant dense<0.000000e+00> : vector<1xf32>
    %18 = vector.multi_reduction <add>, %17, %cst_7 [1, 2] : vector<1x2x256xf32> to vector<1xf32>
    %19 = vector.shape_cast %18 : vector<1xf32> to vector<1x1x1xf32>
    %20 = vector.extract %19[0, 0, 0] : f32 from vector<1x1x1xf32>
    %21 = vector.broadcast %20 : f32 to vector<1x8x128xf32>
    %c0_8 = arith.constant 0 : index
    %c0_9 = arith.constant 0 : index
    %c0_10 = arith.constant 0 : index
    %22 = vector.load %arg3[%c0_8, %c0_9, %c0_10] : memref<1x8x128xf32, #tpu.memory_space<vmem>>, vector<1x8x128xf32>
    tpu.vector_store %arg3[%c0_8, %c0_9, %c0_10], %21 {strides = array<i32>} : memref<1x8x128xf32, #tpu.memory_space<vmem>>, vector<1x8x128xf32>,
    return
  }
  func.func @transform_0(%arg0: i32) -> (i32, i32) {
    %c0_i32 = arith.constant 0 : i32
    %c0_i32_0 = arith.constant 0 : i32
    return %c0_i32, %arg0 : i32, i32
  }
  func.func @transform_1(%arg0: i32) -> (i32, i32) {
    %c0_i32 = arith.constant 0 : i32
    %c0_i32_0 = arith.constant 0 : i32
    return %c0_i32, %arg0 : i32, i32
  }
  func.func @transform_2(%arg0: i32) -> (i32, i32, i32) {
    %c0_i32 = arith.constant 0 : i32
    %c0_i32_0 = arith.constant 0 : i32
    %c0_i32_1 = arith.constant 0 : i32
    return %arg0, %c0_i32, %c0_i32_0 : i32, i32, i32
  }
}

</mosaic_0001>

<bundles_post_ra>
// kernel: tpu_custom_call.1
= control target key start
LH: loop header
LB: loop body
LE: loop exit
PB: predicated region body
PF: predicated region fallthrough
CT: control target
= control target key end

     0   :  { %7 = vsyncpa [#allocation3], 0  ;;  %s207_s0 = inlined_call_operand.hbm [shape: f32[2,256], index: 0, kind: input, shape index: {}]   ;;  %s208_s1 = inlined_call_operand.hbm [shape: f32[2,256], index: 1, kind: input, shape index: {}]   ;;  %s209_s2 = inlined_call_operand.hbm [shape: f32[1,8,128], index: 2, kind: output, shape index: {}]  }
   0x1   :  { %8 = vsyncpa [#allocation6], 0 }
   0x2   :  { %9 = vsyncpa [#allocation4], 0  ;;  %s15_s11 = sshll.u32 %s207_s0, 4  ;;  %s180_s12 = smov [#allocation2]   ;;  %s16_s11 = int_to_ptr.hbm [resolvable:$true] %s15_s11 }
   0x3   :  { %s17_s13 = sshll.u32 %s180_s12, 4  ;;  %s26_s16 = sshll.u32 %s208_s1, 4  ;;  %s18_s13 = int_to_ptr.vmem [resolvable:$true] %s17_s13  ;;  %s27_s16 = int_to_ptr.hbm [resolvable:$true] %s26_s16 }
   0x4   :  { %20 = dma.hbm_to_vmem [thread:$0]  %s16_s11, 64, %s18_s13, [#allocation3]  }
   0x5   :  { %s181_s17 = smov [#allocation5]  }
   0x6   :  { %s28_s18 = sshll.u32 %s181_s17, 4  ;;  %s29_s18 = int_to_ptr.vmem [resolvable:$true] %s28_s18 }
   0x7   :  { %31 = dma.hbm_to_vmem [thread:$0]  %s27_s16, 64, %s29_s18, [#allocation6]  }
   0x8   :  { %174 = dma.done.wait [#allocation3], 64  }
   0x9   :  { %175 = vsyncadd [#allocation3], 4294967232 }
   0xa   :  { %176 = dma.done.wait [#allocation6], 64  }
   0xb   :  { %177 = vsyncadd [#allocation6], 4294967232  ;;  %v40_v0 = vld [vmem:[#allocation2] sm:$0xf]  ;;  %v41_v3 = vld [vmem:[#allocation5] sm:$0xf] }
   0xc   :  { %98 = vlog2.f32 %v40_v0  ;;  %v45_v1 = vsub.f32 1.0, %v40_v0  ;;  %v50_v8 = vsub.f32 1.0, %v41_v3  ;;  %vm60_vm0 = vcmask 1041408   ;;  %s182_s0 = smov [#allocation7]   ;;  %s82_s21 = sshll.u32 %s209_s2, 4  ;;  %s83_s21 = int_to_ptr.hbm [resolvable:$true] %s82_s21 }
   0xd   :  { %s80_s1 = sshll.u32 %s182_s0, 4  ;;  %s81_s1 = int_to_ptr.vmem [resolvable:$true] %s80_s1 }
   0xe   :  { %100 = vlog2.f32 %v45_v1 }
  0x12   :  { %v99_v2 = vpop.eup %98 }
  0x13   :  { %v43_v4 = vmul.f32 0.6931472, %v99_v2 }
  0x14   :  { %v101_v5 = vpop.eup %100 }
  0x15   :  { %v44_v6 = vmax.f32 %v43_v4, -100.0  ;;  %v47_v7 = vmul.f32 0.6931472, %v101_v5 }
  0x17   :  { %v48_v9 = vmax.f32 %v47_v7, -100.0  ;;  %v49_v10 = vmul.f32 %v44_v6, %v41_v3 }
  0x19   :  { %v51_v11 = vmul.f32 %v50_v8, %v48_v9 }
  0x1b   :  { %v52_v12 = vadd.f32 %v51_v11, %v49_v10 }
  0x1d   :  { %v53_v13 = vsub.f32 0.0, %v52_v12 }
  0x1f   :  { %55 = vst [vmem:[#allocation1] ss:$4 sm:$0xff] %v53_v13 }
  0x26   :  { %v56_v14 = vld.sshfl [vmem:[#allocation1] sm:$0xff pattern:$0x73625140]  ;;  %v57_v15 = vld.sshfl [vmem:[#allocation1 + $0x8] sm:$0xff pattern:$0x73625140] }
  0x27   :  { %v61_v16 = vsel %vm60_vm0, %v56_v14, 0.0  ;;  %v62_v17 = vsel %vm60_vm0, %v57_v15, 0.0 }
  0x28   :  { %v63_v18 = vadd.f32 %v62_v17, %v61_v16 }
  0x2a   :  { %64 = vadd.xlane.f32.xlu0 %v63_v18 }
  0x9d   :  { %v65_v19 = vpop.xlane.xlu0 %64 }
  0x9e   :  { %v66_v20 = vrot.slane %v65_v19, 4 }
  0xa0   :  { %v67_v21 = vadd.f32 %v66_v20, %v65_v19 }
  0xa2   :  { %v68_v22 = vrot.slane %v67_v21, 2 }
  0xa4   :  { %v69_v23 = vadd.f32 %v68_v22, %v67_v21 }
  0xa6   :  { %v70_v24 = vrot.slane %v69_v23, 1 }
  0xa8   :  { %v71_v25 = vadd.f32 %v70_v24, %v69_v23 }
  0xaa   :  { %93 = vpush %v71_v25 }
  0xdb   :  { %s94_s22 = spop %93 }
  0xdc   :  { %v73_v26 = vstv %s94_s22 }
  0xdd   :  { %74 = vst [vmem:[#allocation7] sm:$0xff] %v73_v26 }
  0xde   :  { %85 = dma.vmem_to_hbm [thread:$0]  %s81_s1, 128, %s83_s21, [#allocation4]  }
  0xdf   :  { %178 = dma.done.wait [#allocation4], 128  }
  0xe0   :  { %179 = vsyncadd [#allocation4], 4294967168 }
  0xe1   :  { %90 = vsyncpa [#allocation3], 1 }
  0xe2   :  { %91 = vsyncpa [#allocation6], 1 }
  0xe3   :  { %92 = vsyncpa [#allocation4], 1 }

</bundles_post_ra>
